<compile_context>
chip_gen: v5e
topology: v5e:2x2
jax: 0.10.0
libtpu: 0.0.40
codegen_flags: <defaults>
</compile_context>

<pallas_src>
import functools

import jax
import jax.numpy as jnp
from jax.experimental import pallas as pl
from jax.experimental.pallas import tpu as pltpu

D_IN = 7
D_IN_PAD = 8          # feature rows (sublane axis), padded 7 -> 8 with a zero row
HID = 64
HID_PAD = 72          # hidden rows (sublane axis): 64 real + bias row, x8 aligned
BIAS_ROW = HID        # row 64 carries the folded fc2 bias trick


def mlp_kernel(xt_ref, w1t_ref, b1_ref, w2_ref, o_ref):
    # xt_ref : (8, tb)   feature-major input tile (row 7 is zero padding)
    # w1t_ref: (72, 8)   fc1 weight^T (rows >= 64 and col 7 are zero)
    # b1_ref : (72, 1)   fc1 bias column; row 64 holds 1.0 (bias feature)
    # w2_ref : (72, 1)   fc2 weight column; row 64 holds fc2's bias b2
    # o_ref  : (1, tb)   output row (batch on lanes -> lane-dense store)
    xt = xt_ref[...]
    h = jnp.dot(w1t_ref[...], xt, preferred_element_type=jnp.float32)   # MXU (72, tb)
    h = jnp.maximum(h + b1_ref[...], 0.0)        # VPU bias + ReLU; row 64 == 1.0 exactly
    # fc2 has N=1: skip the MXU -> VPU elementwise mul + XLU sublane reduce.
    # Row 64 contributes 1.0 * b2, so fc2's bias is already included.
    y = jnp.sum(h * w2_ref[...], axis=0, keepdims=True)                 # (1, tb)
    o_ref[...] = y.astype(o_ref.dtype)


def pack_params(w1, b1, w2, b2):
    """Pack fc1/fc2 params into the transposed, padded layout.

    w1: (7, 64) stored [in, out], b1: (64,), w2: (64, 1), b2: (1,).
    Returns:
      w1t (72, 8): w1^T, zero-padded (rows >= 64, col 7)
      b1c (72, 1): fc1 bias column, row 64 = 1.0 (bias feature)
      w2c (72, 1): fc2 weight column, row 64 = b2 (folded fc2 bias)
    """
    w1t = jnp.zeros((HID_PAD, D_IN_PAD), jnp.float32)
    w1t = w1t.at[:HID, :D_IN].set(w1.astype(jnp.float32).T)
    b1c = jnp.zeros((HID_PAD, 1), jnp.float32)
    b1c = b1c.at[:HID, 0].set(b1.astype(jnp.float32))
    b1c = b1c.at[BIAS_ROW, 0].set(1.0)
    w2c = jnp.zeros((HID_PAD, 1), jnp.float32)
    w2c = w2c.at[:HID, 0].set(w2[:, 0].astype(jnp.float32))
    w2c = w2c.at[BIAS_ROW, 0].set(b2.reshape(()).astype(jnp.float32))
    return w1t, b1c, w2c


def _round_up(n, m):
    return -(-n // m) * m


@functools.partial(jax.jit, static_argnames=("tile_b",))
def simple_model_forward(x, w1t, b1c, w2c, *, tile_b=8192):
    B, f_in = x.shape
    assert f_in == D_IN

    # Feature-major layout: (8, B) f32 (7 real rows + 1 zero row). One fused
    # transpose+pad pass; exact since w1^T's padded column is zero.
    xt = jnp.pad(x.astype(jnp.float32).T, ((0, D_IN_PAD - D_IN), (0, 0)))

    # Batch tiling (batch lives on the lane axis):
    #  * small B: one block covering the whole batch (block == full dims).
    #  * larger B: lane-aligned tiles (multiple of 128) capped at tile_b and
    #    at least 2 tiles so v7x's two TensorCores both get work.
    if B <= 256:
        tb = B
    else:
        tb = min(tile_b, _round_up(-(-B // 2), 128))
    n_tiles = -(-B // tb)
    b_pad = n_tiles * tb
    if b_pad != B:
        xt = jnp.pad(xt, ((0, 0), (0, b_pad - B)))

    out = pl.pallas_call(
        mlp_kernel,
        out_shape=jax.ShapeDtypeStruct((1, b_pad), jnp.float32),
        grid=(n_tiles,),
        in_specs=[
            pl.BlockSpec((D_IN_PAD, tb), lambda i: (0, i)),        # x tiles stream per step
            pl.BlockSpec((HID_PAD, D_IN_PAD), lambda i: (0, 0)),   # params stay VMEM-resident
            pl.BlockSpec((HID_PAD, 1), lambda i: (0, 0)),
            pl.BlockSpec((HID_PAD, 1), lambda i: (0, 0)),
        ],
        out_specs=pl.BlockSpec((1, tb), lambda i: (0, i)),
        compiler_params=pltpu.CompilerParams(
            # Batch tiles are independent -> v7x's 2 TCs split the grid;
            # harmless on single-TC v5e/v6e.
            dimension_semantics=("parallel",),
            # (72, tb) f32 h temp + double-buffered x/out blocks stay well
            # under 32 MiB at tb=8192; v5e's scoped default is only 16 MiB,
            # so be explicit.  32 MiB is also safe on v7x (64 MiB physical).
            vmem_limit_bytes=32 * 1024 * 1024,
        ),
    )(xt, w1t, b1c, w2c)
    return out[:, :B].T   # (B, 1)


def init_params(key, input_size=D_IN, hidden_size=HID):
    # Mirrors nn.Linear's default init (uniform +/- 1/sqrt(fan_in)); weights are
    # stored transposed relative to PyTorch, i.e. (in_features, out_features).
    k1, k2, k3, k4 = jax.random.split(key, 4)
    bound1 = 1.0 / jnp.sqrt(jnp.float32(input_size))
    bound2 = 1.0 / jnp.sqrt(jnp.float32(hidden_size))
    w1 = jax.random.uniform(k1, (input_size, hidden_size), jnp.float32, -bound1, bound1)
    b1 = jax.random.uniform(k2, (hidden_size,), jnp.float32, -bound1, bound1)
    w2 = jax.random.uniform(k3, (hidden_size, 1), jnp.float32, -bound2, bound2)
    b2 = jax.random.uniform(k4, (1,), jnp.float32, -bound2, bound2)
    return w1, b1, w2, b2


if __name__ == "__main__":
    key = jax.random.PRNGKey(0)
    k_x, k_p = jax.random.split(key)

    w1, b1, w2, b2 = init_params(k_p)
    w1t, b1c, w2c = pack_params(w1, b1, w2, b2)

    def ref_forward(xin):
        return jnp.maximum(xin @ w1 + b1, 0.0) @ w2 + b2

    # Small batch (single tile path).
    batch = 8
    x = jax.random.normal(k_x, (batch, D_IN), jnp.float32)
    out = simple_model_forward(x, w1t, b1c, w2c)
    jax.block_until_ready(out)
    assert out.shape == (batch, 1)
    assert jnp.allclose(out, ref_forward(x), atol=1e-5, rtol=1e-5)

    # Multi-tile path (2 lane-aligned tiles + ragged-tail padding).
    batch2 = 384
    x2 = jax.random.normal(jax.random.PRNGKey(1), (batch2, D_IN), jnp.float32)
    out2 = simple_model_forward(x2, w1t, b1c, w2c)
    jax.block_until_ready(out2)
    assert out2.shape == (batch2, 1)
    assert jnp.allclose(out2, ref_forward(x2), atol=1e-5, rtol=1e-5)

    print("KERNEL_OK")
</pallas_src>

<mosaic_0001>
module attributes {stable_mosaic.version = 11 : i64} {
  func.func @mlp_kernel(%arg0: i32, %arg1: memref<8x8xf32, #tpu.memory_space<vmem>>, %arg2: memref<72x8xf32, #tpu.memory_space<vmem>>, %arg3: memref<72x1xf32, #tpu.memory_space<vmem>>, %arg4: memref<72x1xf32, #tpu.memory_space<vmem>>, %arg5: memref<1x8xf32, #tpu.memory_space<vmem>>) attributes {dimension_semantics = [#tpu.dimension_semantics<parallel>], iteration_bounds = array<i64: 1>, scalar_prefetch = 0 : i64, scratch_operands = 0 : i64, tpu.core_type = #tpu.core_type<tc>, window_params = [{transform_indices = @transform_0, window_bounds = array<i64: 8, 8>}, {pipeline_mode = #tpu.pipeline_mode<synchronous>, transform_indices = @transform_1, window_bounds = array<i64: 72, 8>}, {pipeline_mode = #tpu.pipeline_mode<synchronous>, transform_indices = @transform_2, window_bounds = array<i64: 72, 1>}, {pipeline_mode = #tpu.pipeline_mode<synchronous>, transform_indices = @transform_3, window_bounds = array<i64: 72, 1>}, {transform_indices = @transform_4, window_bounds = array<i64: 1, 8>}]} {
    %c0 = arith.constant 0 : index
    %c0_0 = arith.constant 0 : index
    %0 = vector.load %arg1[%c0, %c0_0] : memref<8x8xf32, #tpu.memory_space<vmem>>, vector<8x8xf32>
    %c0_1 = arith.constant 0 : index
    %c0_2 = arith.constant 0 : index
    %1 = vector.load %arg2[%c0_1, %c0_2] : memref<72x8xf32, #tpu.memory_space<vmem>>, vector<72x8xf32>
    %cst = arith.constant dense<0.000000e+00> : vector<72x8xf32>
    %2 = tpu.matmul %1, %0, %cst {dimension_numbers = #tpu.dot_dimension_numbers<[1], [0], [0], [1], [0, 0, 1, 1], [], []>} : vector<72x8xf32>, vector<8x8xf32>, vector<72x8xf32> -> vector<72x8xf32>
    %c0_3 = arith.constant 0 : index
    %c0_4 = arith.constant 0 : index
    %3 = vector.load %arg3[%c0_3, %c0_4] : memref<72x1xf32, #tpu.memory_space<vmem>>, vector<72x1xf32>
    %4 = vector.broadcast %3 : vector<72x1xf32> to vector<72x8xf32>
    %5 = arith.addf %2, %4 : vector<72x8xf32>
    %cst_5 = arith.constant 0.000000e+00 : f32
    %6 = vector.broadcast %cst_5 : f32 to vector<72x8xf32>
    %7 = arith.maximumf %5, %6 : vector<72x8xf32>
    %c0_6 = arith.constant 0 : index
    %c0_7 = arith.constant 0 : index
    %8 = vector.load %arg4[%c0_6, %c0_7] : memref<72x1xf32, #tpu.memory_space<vmem>>, vector<72x1xf32>
    %9 = vector.broadcast %8 : vector<72x1xf32> to vector<72x8xf32>
    %10 = arith.mulf %7, %9 : vector<72x8xf32>
    %cst_8 = arith.constant dense<0.000000e+00> : vector<8xf32>
    %11 = vector.multi_reduction <add>, %10, %cst_8 [0] : vector<72x8xf32> to vector<8xf32>
    %12 = vector.shape_cast %11 : vector<8xf32> to vector<1x8xf32>
    %c0_9 = arith.constant 0 : index
    %c0_10 = arith.constant 0 : index
    %13 = vector.load %arg5[%c0_9, %c0_10] : memref<1x8xf32, #tpu.memory_space<vmem>>, vector<1x8xf32>
    tpu.vector_store %arg5[%c0_9, %c0_10], %12 {strides = array<i32>} : memref<1x8xf32, #tpu.memory_space<vmem>>, vector<1x8xf32>,
    return
  }
  func.func @transform_0(%arg0: i32) -> (i32, i32) {
    %c0_i32 = arith.constant 0 : i32
    %c0_i32_0 = arith.constant 0 : i32
    return %c0_i32, %arg0 : i32, i32
  }
  func.func @transform_1(%arg0: i32) -> (i32, i32) {
    %c0_i32 = arith.constant 0 : i32
    %c0_i32_0 = arith.constant 0 : i32
    %c0_i32_1 = arith.constant 0 : i32
    return %c0_i32, %c0_i32_0 : i32, i32
  }
  func.func @transform_2(%arg0: i32) -> (i32, i32) {
    %c0_i32 = arith.constant 0 : i32
    %c0_i32_0 = arith.constant 0 : i32
    %c0_i32_1 = arith.constant 0 : i32
    return %c0_i32, %c0_i32_0 : i32, i32
  }
  func.func @transform_3(%arg0: i32) -> (i32, i32) {
    %c0_i32 = arith.constant 0 : i32
    %c0_i32_0 = arith.constant 0 : i32
    %c0_i32_1 = arith.constant 0 : i32
    return %c0_i32, %c0_i32_0 : i32, i32
  }
  func.func @transform_4(%arg0: i32) -> (i32, i32) {
    %c0_i32 = arith.constant 0 : i32
    %c0_i32_0 = arith.constant 0 : i32
    return %c0_i32, %arg0 : i32, i32
  }
}

</mosaic_0001>

<bundles_post_ra>
// kernel: simple_model_forward.1
= control target key start
LH: loop header
LB: loop body
LE: loop exit
PB: predicated region body
PF: predicated region fallthrough
CT: control target
= control target key end

     0   :  { %v310_v1 = vmov 0   ;;  %vm82_vm0 = vcmask 64512   ;;  %s442_s0 = inlined_call_operand.vmem [shape: f32[8,8], index: 0, kind: input, shape index: {}]   ;;  %s443_s1 = inlined_call_operand.vmem [shape: f32[72,8], index: 1, kind: input, shape index: {}]   ;;  %s444_s2 = inlined_call_operand.vmem [shape: f32[72,1], index: 2, kind: input, shape index: {}]   ;;  %s445_s3 = inlined_call_operand.vmem [shape: f32[72,1], index: 3, kind: input, shape index: {}]   ;;  %s446_s4 = inlined_call_operand.hbm [shape: f32[1,8], index: 4, kind: output, shape index: {}]  }
   0x1   :  { %v18_v0 = vld [vmem:[%s442_s0] sm:$0xff]  ;;  %283 = vset.pattern.permute.xlu2 %v310_v1  ;;  %282 = vset.pattern.permute.xlu1 %v310_v1  ;;  %v30_v3 = vld [vmem:[%s444_s2 + $0x10] sm:$0xff]  ;;  %v20_v6 = vld [vmem:[%s443_s1 + $0x8] sm:$0xff] }
   0x2   :  { %v32_v2 = vld [vmem:[%s444_s2 + $0x20] sm:$0xff]  ;;  %281 = vset.pattern.permute.xlu0 %v310_v1  ;;  %125 = vmatpush.msra.mxu0 %v18_v0  ;;  %v26_v8 = vld [vmem:[%s443_s1 + $0x38] sm:$0xff] }
   0x3   :  { %v28_v4 = vld [vmem:[%s444_s2] sm:$0xff]  ;;  %276 = vmatpush.msra.mxu1 %v18_v0  ;;  %277 = vmatpush.msra.mxu2 %v18_v0 }
   0x4   :  { %v19_v5 = vld [vmem:[%s443_s1] sm:$0xff]  ;;  %278 = vmatpush.msra.mxu3 %v18_v0  ;;  %59 = vperm.xlu2 %283, %v32_v2  }
   0x5   :  { %v23_v7 = vld [vmem:[%s443_s1 + $0x20] sm:$0xff]  ;;  %49 = vperm.xlu1 %282, %v30_v3   ;;  %39 = vperm.xlu0 %281, %v28_v4  }
   0x6   :  { %267 = vmatmul.msk.f32.vlgmr.msra.gmra.mxu0 %vm82_vm0, %v19_v5  ;;  %268 = vmatmul.msk.f32.vlgmr.msra.gmra.mxu1 %vm82_vm0, %v20_v6 }
   0x7   :  { %271 = vmatmul.msk.f32.vlgmr.msra.gmra.mxu2 %vm82_vm0, %v23_v7  ;;  %274 = vmatmul.msk.f32.vlgmr.msra.gmra.mxu3 %vm82_vm0, %v26_v8 }
   0x8   :  { %9 = vsyncpa [#allocation3], 0  ;;  %v33_v9 = vld [vmem:[%s444_s2 + $0x28] sm:$0xff]  ;;  %v31_v10 = vld [vmem:[%s444_s2 + $0x18] sm:$0xff]  ;;  %s258_s18 = sshll.u32 %s446_s4, 4  ;;  %vm249_vm1 = vcmask 57344   ;;  %s259_s18 = int_to_ptr.hbm [resolvable:$true] %s258_s18 }
   0x9   :  { %v29_v11 = vld [vmem:[%s444_s2 + $0x8] sm:$0xff]  ;;  %v21_v12 = vld [vmem:[%s443_s1 + $0x10] sm:$0xff]  ;;  %v27_v14 = vld [vmem:[%s443_s1 + $0x40] sm:$0xff] }
   0xa   :  { %v24_v13 = vld [vmem:[%s443_s1 + $0x28] sm:$0xff]  ;;  %v163_v16 = vld [vmem:[%s445_s3] sm:$0xff]  ;;  %v34_v17 = vld [vmem:[%s444_s2 + $0x30] sm:$0xff] }
   0xb   :  { %v164_v15 = vld [vmem:[%s445_s3 + $0x8] sm:$0xff]  ;;  %v22_v18 = vld [vmem:[%s443_s1 + $0x18] sm:$0xff]  ;;  %v25_v19 = vld [vmem:[%s443_s1 + $0x30] sm:$0xff] }
   0xc   :  { %64 = vperm.xlu2 %283, %v33_v9   ;;  %v167_v20 = vld [vmem:[%s445_s3 + $0x20] sm:$0xff]  ;;  %v166_v21 = vld [vmem:[%s445_s3 + $0x18] sm:$0xff]  ;;  %v165_v22 = vld [vmem:[%s445_s3 + $0x10] sm:$0xff] }
   0xd   :  { %54 = vperm.xlu1 %282, %v31_v10   ;;  %44 = vperm.xlu0 %281, %v29_v11   ;;  %v36_v23 = vld [vmem:[%s444_s2 + $0x40] sm:$0xff]  ;;  %v168_v24 = vld [vmem:[%s445_s3 + $0x28] sm:$0xff]  ;;  %v35_v25 = vld [vmem:[%s444_s2 + $0x38] sm:$0xff]  ;;  %s311_s2 = smov [#allocation2]  }
   0xe   :  { %269 = vmatmul.msk.f32.gmra.mxu1 %vm82_vm0, %v21_v12  ;;  %v171_v26 = vld [vmem:[%s445_s3 + $0x40] sm:$0xff]  ;;  %v170_v27 = vld [vmem:[%s445_s3 + $0x38] sm:$0xff]  ;;  %v169_v28 = vld [vmem:[%s445_s3 + $0x30] sm:$0xff]  ;;  %s256_s3 = sshll.u32 %s311_s2, 4  ;;  %s257_s3 = int_to_ptr.vmem [resolvable:$true] %s256_s3 }
   0xf   :  { %272 = vmatmul.msk.f32.gmra.mxu2 %vm82_vm0, %v24_v13  ;;  %275 = vmatmul.msk.f32.gmra.mxu3 %vm82_vm0, %v27_v14 }
  0x14   :  { %179 = vperm.xlu2 %283, %v164_v15  }
  0x15   :  { %174 = vperm.xlu1 %282, %v163_v16   ;;  %69 = vperm.xlu0 %281, %v34_v17  }
  0x16   :  { %270 = vmatmul.msk.f32.gmra.mxu1 %vm82_vm0, %v22_v18 }
  0x17   :  { %273 = vmatmul.msk.f32.gmra.mxu2 %vm82_vm0, %v25_v19 }
  0x1c   :  { %194 = vperm.xlu2 %283, %v167_v20  }
  0x1d   :  { %189 = vperm.xlu1 %282, %v166_v21   ;;  %184 = vperm.xlu0 %281, %v165_v22  }
  0x24   :  { %79 = vperm.xlu2 %283, %v36_v23  }
  0x25   :  { %199 = vperm.xlu1 %282, %v168_v24   ;;  %74 = vperm.xlu0 %281, %v35_v25  }
  0x2c   :  { %214 = vperm.xlu2 %283, %v171_v26  }
  0x2d   :  { %209 = vperm.xlu1 %282, %v170_v27   ;;  %204 = vperm.xlu0 %281, %v169_v28  }
  0x5e   :  { %v60_v29 = vpop.permute.xlu2 %59 }
  0x66   :  { %v65_v32 = vpop.permute.xlu2 %64 }
  0x6e   :  { %v180_v35 = vpop.permute.xlu2 %179 }
  0x76   :  { %v195_v44 = vpop.permute.xlu2 %194 }
  0x77   :  { %v50_v30 = vpop.permute.xlu1 %49  ;;  %v40_v31 = vpop.permute.xlu0 %39 }
  0x7e   :  { %v80_v62 = vpop.permute.xlu2 %79 }
  0x7f   :  { %v55_v33 = vpop.permute.xlu1 %54  ;;  %v45_v34 = vpop.permute.xlu0 %44 }
  0x83   :  { %v130_v36 = vpop.f32.mrf.mxu1  ;;  %v127_v37 = vpop.f32.mrf.mxu0 }
  0x84   :  { %v128_v40 = vadd.f32 %v127_v37, %v40_v31  ;;  %v131_v41 = vadd.f32 %v130_v36, %v45_v34 }
  0x86   :  { %v154_v45 = vmax.f32 %v128_v40, 0.0  ;;  %v155_v46 = vmax.f32 %v131_v41, 0.0  ;;  %v215_v27 = vpop.permute.xlu2 %214 }
  0x87   :  { %v175_v38 = vpop.permute.xlu1 %174  ;;  %v70_v39 = vpop.permute.xlu0 %69 }
  0x88   :  { %v218_v52 = vmul.f32 %v180_v35, %v155_v46  ;;  %v217_v53 = vmul.f32 %v175_v38, %v154_v45 }
  0x8a   :  { %v139_v42 = vpop.f32.mrf.mxu2  ;;  %v148_v47 = vpop.f32.mrf.mxu3  ;;  %v226_v58 = vsel %vm82_vm0, %v217_v53, 0.0  ;;  %v227_v59 = vsel %vm82_vm0, %v218_v52, 0.0 }
  0x8b   :  { %v133_v43 = vpop.f32.mrf.mxu1  ;;  %v140_v54 = vadd.f32 %v139_v42, %v60_v29  ;;  %v228_v3 = vadd.f32 %v227_v59, %v226_v58 }
  0x8c   :  { %v134_v48 = vadd.f32 %v133_v43, %v50_v30 }
  0x8d   :  { %v158_v60 = vmax.f32 %v140_v54, 0.0 }
  0x8e   :  { %v156_v49 = vmax.f32 %v134_v48, 0.0 }
  0x8f   :  { %v190_v50 = vpop.permute.xlu1 %189  ;;  %v185_v51 = vpop.permute.xlu0 %184  ;;  %v221_v6 = vmul.f32 %v195_v44, %v158_v60 }
  0x90   :  { %v219_v55 = vmul.f32 %v185_v51, %v156_v49 }
  0x91   :  { %v233_v16 = vsel %vm82_vm0, %v221_v6, 0.0 }
  0x92   :  { %v142_v56 = vpop.f32.mrf.mxu2  ;;  %v229_v63 = vsel %vm82_vm0, %v219_v55, 0.0  ;;  %v151_v1 = vpop.f32.mrf.mxu3 }
  0x93   :  { %v136_v57 = vpop.f32.mrf.mxu1  ;;  %v143_v0 = vadd.f32 %v142_v56, %v65_v32  ;;  %v230_v8 = vadd.f32 %v229_v63, %v228_v3  ;;  %v152_v10 = vadd.f32 %v151_v1, %v80_v62 }
  0x94   :  { %v137_v61 = vadd.f32 %v136_v57, %v55_v33 }
  0x95   :  { %v159_v9 = vmax.f32 %v143_v0, 0.0  ;;  %v162_v19 = vmax.f32 %v152_v10, 0.0 }
  0x96   :  { %v157_v2 = vmax.f32 %v137_v61, 0.0 }
  0x97   :  { %v200_v4 = vpop.permute.xlu1 %199  ;;  %v75_v5 = vpop.permute.xlu0 %74  ;;  %v225_v29 = vmul.f32 %v215_v27, %v162_v19 }
  0x98   :  { %v220_v7 = vmul.f32 %v190_v50, %v157_v2  ;;  %v149_v12 = vadd.f32 %v148_v47, %v75_v5  ;;  %v222_v17 = vmul.f32 %v200_v4, %v159_v9 }
  0x99   :  { %v241_v34 = vsel %vm82_vm0, %v225_v29, 0.0 }
  0x9a   :  { %v231_v11 = vsel %vm82_vm0, %v220_v7, 0.0  ;;  %v145_v13 = vpop.f32.mrf.mxu2  ;;  %v161_v20 = vmax.f32 %v149_v12, 0.0  ;;  %v235_v24 = vsel %vm82_vm0, %v222_v17, 0.0 }
  0x9b   :  { %v232_v14 = vadd.f32 %v231_v11, %v230_v8  ;;  %v146_v15 = vadd.f32 %v145_v13, %v70_v39 }
  0x9d   :  { %v234_v18 = vadd.f32 %v233_v16, %v232_v14  ;;  %v160_v21 = vmax.f32 %v146_v15, 0.0 }
  0x9f   :  { %v210_v22 = vpop.permute.xlu1 %209  ;;  %v205_v23 = vpop.permute.xlu0 %204  ;;  %v236_v28 = vadd.f32 %v235_v24, %v234_v18 }
  0xa0   :  { %v224_v25 = vmul.f32 %v210_v22, %v161_v20  ;;  %v223_v26 = vmul.f32 %v205_v23, %v160_v21 }
  0xa2   :  { %v237_v30 = vsel %vm82_vm0, %v223_v26, 0.0  ;;  %v239_v32 = vsel %vm82_vm0, %v224_v25, 0.0 }
  0xa3   :  { %v238_v31 = vadd.f32 %v237_v30, %v236_v28 }
  0xa5   :  { %v240_v33 = vadd.f32 %v239_v32, %v238_v31 }
  0xa7   :  { %v242_v35 = vadd.f32 %v241_v34, %v240_v33 }
  0xa9   :  { %v243_v36 = vrot.slane %v242_v35, 4 }
  0xab   :  { %v244_v37 = vadd.f32 %v243_v36, %v242_v35 }
  0xad   :  { %v245_v38 = vrot.slane %v244_v37, 2 }
  0xaf   :  { %v246_v39 = vadd.f32 %v245_v38, %v244_v37 }
  0xb1   :  { %v247_v40 = vrot.slane %v246_v39, 1 }
  0xb3   :  { %v248_v41 = vadd.f32 %v247_v40, %v246_v39 }
  0xb5   :  { %250 = vst.msk [vmem:[#allocation2] sm:$0x1] %vm249_vm1, %v248_v41 }
  0xb6   :  { %261 = dma.vmem_to_hbm [thread:$0]  %s257_s3, 16, %s259_s18, [#allocation3]  }
  0xb7   :  { %308 = dma.done.wait [#allocation3], 16  }
  0xb8   :  { %309 = vsyncadd [#allocation3], 4294967280 }
  0xb9   :  { %266 = vsyncpa [#allocation3], 1 }

</bundles_post_ra>
